<compile_context>
chip_gen: v5e
topology: v5e:2x2
jax: 0.10.0
libtpu: 0.0.40
codegen_flags: <defaults>
</compile_context>

<pallas_src>
from functools import partial

import jax
import jax.numpy as jnp
from jax import lax
from jax.experimental import pallas as pl
from jax.experimental.pallas import tpu as pltpu


# ----------------------------------------------------------------------------
# tiling / padding helpers
# ----------------------------------------------------------------------------

def _round_up(x: int, m: int) -> int:
    return ((x + m - 1) // m) * m


def _cdiv(a: int, b: int) -> int:
    return -(-a // b)


def _vmem_budget_bytes() -> int:
    """Generation-aware VMEM budget (leaves headroom for Mosaic scratch)."""
    phys = 64 << 20                      # assume the smallest (v7x) if query fails
    try:
        phys = int(pltpu.get_tpu_info().vmem_capacity_bytes)
    except Exception:
        pass
    # v5e/v6e (128 MiB) -> 100 MiB budget, v7x (64 MiB) -> 52 MiB budget.
    return int(max(min(phys - (12 << 20), 100 << 20), 32 << 20))


def _choose_tiles(M: int, K: int, itemsize: int, budget: int):
    """Pick (tm, tk, Mp, Kp).  tk is solved from the VMEM budget."""
    sublane = 8 if itemsize >= 4 else (16 if itemsize == 2 else 32)

    # ---- row tile (tm) & padded row count (Mp) ----
    if M <= 128:
        tm = _round_up(M, sublane)
        Mp = tm
    else:
        # Prefer a 256-row stripe (feeds the 256x256 MXU on v6e/v7x and halves
        # the redundant re-streaming of F) unless it pads M more than a
        # 128-row stripe would.
        cands = [(_round_up(M, t), -t, t) for t in (256, 128)]
        Mp, _, tm = min(cands)           # smallest padding; tie -> larger tm

    # ---- k tile from the VMEM budget ----
    # Per-step VMEM: double-buffered (Mp, tk) feature stream
    #              + resident f32 (tm, Mp) accumulator
    #              + double-buffered f32 (tm, Mp) output / target block.
    k_aligned = _round_up(K, 128)
    fixed = tm * Mp * 4 + 2 * tm * Mp * 4
    avail = max(budget - fixed, 2 * Mp * 128 * itemsize)
    tk_max = max((avail // (2 * Mp * itemsize)) // 128 * 128, 128)
    if tk_max >= k_aligned:
        tk = k_aligned
    else:
        nk = _cdiv(k_aligned, tk_max)
        tk = _round_up(_cdiv(k_aligned, nk), 128)
    Kp = _round_up(K, tk)
    return tm, tk, Mp, Kp


def _prep(x, compute_dtype=None):
    """NCHW -> padded (Mp, Kp) feature matrix + tiling metadata (plain-JAX glue)."""
    a, b, c, d = x.shape
    M, K = a * b, c * d
    feats = x.reshape(M, K)
    if compute_dtype is not None and feats.dtype != jnp.dtype(compute_dtype):
        feats = feats.astype(compute_dtype)      # e.g. bf16: native MXU feed
    budget = _vmem_budget_bytes()
    tm, tk, Mp, Kp = _choose_tiles(M, K, feats.dtype.itemsize, budget)
    if (Mp, Kp) != (M, K):
        feats = jnp.pad(feats, ((0, Mp - M), (0, Kp - K)))
    norm = a * b * c * d                         # UNPADDED normalization
    return feats, M, K, Mp, Kp, tm, tk, norm, budget


# ----------------------------------------------------------------------------
# kernels
# ----------------------------------------------------------------------------

def _gram_kernel_factory(tm: int, inv_norm: float):
    """Row-stripe gram: G[m-block, :] = (F[m-block, :] @ F.T) * inv_norm.

    The row stripe is sliced out of the resident (Mp, tk) block — no separate
    (tm, tk) input stream.
    """

    def kernel(f_all_ref, g_ref, acc_ref):
        k = pl.program_id(1)

        @pl.when(k == 0)
        def _():
            acc_ref[...] = jnp.zeros_like(acc_ref)

        row_start = pl.multiple_of(pl.program_id(0) * tm, tm)
        f_row = f_all_ref[pl.ds(row_start, tm), :]
        # Contract on axis 1 of both operands: (tm, tk) x (Mp, tk) -> (tm, Mp).
        # No transposed copy of F is materialized.
        acc_ref[...] += lax.dot_general(
            f_row, f_all_ref[...],
            dimension_numbers=(((1,), (1,)), ((), ())),
            preferred_element_type=jnp.float32)

        @pl.when(k == pl.num_programs(1) - 1)
        def _():
            g_ref[...] = acc_ref[...] * inv_norm

    return kernel


def _loss_kernel_factory(tm: int, inv_norm: float):
    """Row-stripe gram + sum((G - T)^2) over the stripe; no gram HBM writeback."""

    def kernel(f_all_ref, t_ref, loss_ref, acc_ref):
        k = pl.program_id(1)

        @pl.when(k == 0)
        def _():
            acc_ref[...] = jnp.zeros_like(acc_ref)

        row_start = pl.multiple_of(pl.program_id(0) * tm, tm)
        f_row = f_all_ref[pl.ds(row_start, tm), :]
        acc_ref[...] += lax.dot_general(
            f_row, f_all_ref[...],
            dimension_numbers=(((1,), (1,)), ((), ())),
            preferred_element_type=jnp.float32)

        @pl.when(k == pl.num_programs(1) - 1)
        def _():
            diff = acc_ref[...] * inv_norm - t_ref[...].astype(jnp.float32)
            loss_ref[0, 0] = jnp.sum(diff * diff)     # scalar -> SMEM

    return kernel


# ----------------------------------------------------------------------------
# pallas_call wrappers
# ----------------------------------------------------------------------------

def _gram_padded(feats_p, tm, tk, Mp, Kp, norm, vmem_limit):
    grid = (Mp // tm, Kp // tk)
    return pl.pallas_call(
        _gram_kernel_factory(tm, 1.0 / float(norm)),
        out_shape=jax.ShapeDtypeStruct((Mp, Mp), jnp.float32),
        grid_spec=pltpu.PrefetchScalarGridSpec(
            num_scalar_prefetch=0,
            grid=grid,
            in_specs=[
                pl.BlockSpec((Mp, tk), lambda m, k: (0, k)),   # F (all rows)
            ],
            out_specs=pl.BlockSpec((tm, Mp), lambda m, k: (m, 0)),
            scratch_shapes=[pltpu.VMEM((tm, Mp), jnp.float32)],
        ),
        compiler_params=pltpu.CompilerParams(
            dimension_semantics=("parallel", "arbitrary"),
            vmem_limit_bytes=vmem_limit),
    )(feats_p)


def _style_loss(feats_p, target_gram_p, tm, tk, Mp, Kp, norm, m_true, vmem_limit):
    grid = (Mp // tm, Kp // tk)
    partial_sums = pl.pallas_call(
        _loss_kernel_factory(tm, 1.0 / float(norm)),
        out_shape=jax.ShapeDtypeStruct((Mp // tm, 1), jnp.float32),
        grid_spec=pltpu.PrefetchScalarGridSpec(
            num_scalar_prefetch=0,
            grid=grid,
            in_specs=[
                pl.BlockSpec((Mp, tk), lambda m, k: (0, k)),   # F (all rows)
                pl.BlockSpec((tm, Mp), lambda m, k: (m, 0)),   # target stripe
            ],
            # Scalar partial loss per row-block via SMEM (no masked vst / tiny DMA).
            out_specs=pl.BlockSpec((1, 1), lambda m, k: (m, 0),
                                   memory_space=pltpu.SMEM),
            scratch_shapes=[pltpu.VMEM((tm, Mp), jnp.float32)],
        ),
        compiler_params=pltpu.CompilerParams(
            dimension_semantics=("parallel", "arbitrary"),
            vmem_limit_bytes=vmem_limit),
    )(feats_p, target_gram_p)
    # MSE divisor uses the UNPADDED gram size (padded rows/cols are zero in both
    # G and target, so they contribute nothing to the sum).
    return jnp.sum(partial_sums) / float(m_true * m_true)


@partial(jax.jit, static_argnames=("compute_dtype",))
def _gram_matrix_impl(x, compute_dtype=None):
    feats_p, M, _, Mp, Kp, tm, tk, norm, budget = _prep(x, compute_dtype)
    g = _gram_padded(feats_p, tm, tk, Mp, Kp, norm, budget)
    return g[:M, :M].astype(x.dtype)     # match PyTorch: gram has input dtype


def gram_matrix_pallas(x, compute_dtype=None):
    """Pallas equivalent of the PyTorch gram_matrix() on an NCHW tensor."""
    return _gram_matrix_impl(x, compute_dtype=compute_dtype)


class StyleLossPallas:
    """JAX/Pallas port of StyleLoss.  Holds the detached target gram matrix.

    compute_dtype=jnp.bfloat16 halves HBM traffic / VMEM for the feature
    stream and runs the MXU at native bf16 rate, at a small numerics cost
    versus the f32 reference (f32 accumulation is always used).
    """

    def __init__(self, target_feature, compute_dtype=None):
        self._compute_dtype = compute_dtype
        feats_p, M, _, Mp, Kp, tm, tk, norm, budget = _prep(
            target_feature, compute_dtype)
        # Target computed once at construction (gram-only kernel, no loss path).
        self._target_gram_p = _gram_padded(feats_p, tm, tk, Mp, Kp, norm, budget)
        self.target = self._target_gram_p[:M, :M]
        self._M = M
        self._Mp = Mp
        self.loss = None
        # Fuse reshape/pad + loss kernel under one jit (shapes are static at
        # trace time, so the tile selection runs at trace time).
        self._loss_fn = jax.jit(self._loss_impl)

    def _loss_impl(self, x, target_gram_p):
        feats_p, M, _, Mp, Kp, tm, tk, norm, budget = _prep(x, self._compute_dtype)
        if target_gram_p.shape[0] != Mp:
            raise ValueError("input gram shape must match target gram shape")
        return _style_loss(feats_p, target_gram_p, tm, tk, Mp, Kp, norm, M, budget)

    def forward(self, x):
        a, b, _, _ = x.shape
        if a * b != self._M:
            raise ValueError("input gram shape must match target gram shape")
        # Loss-only kernel: no (M, M) gram writeback to HBM.
        self.loss = self._loss_fn(x, self._target_gram_p)
        return x  # identity passthrough, same as the PyTorch module

    __call__ = forward


if __name__ == "__main__":
    key = jax.random.PRNGKey(0)
    k_tgt, k_in = jax.random.split(key)

    # Small NCHW shapes: batch=2, channels=4, spatial=16x16
    target_feature = jax.random.normal(k_tgt, (2, 4, 16, 16), dtype=jnp.float32)
    x = jax.random.normal(k_in, (2, 4, 16, 16), dtype=jnp.float32)

    module = StyleLossPallas(target_feature)
    out = module(x)

    out = jax.block_until_ready(out)
    loss = jax.block_until_ready(module.loss)

    # Sanity: forward returns its input unchanged, loss is a finite scalar.
    assert out.shape == x.shape
    assert bool(jnp.all(out == x))
    assert bool(jnp.isfinite(loss))

    # Reference check against plain-JAX gram / mse.
    def gram_ref(t):
        a, b, c, d = t.shape
        f = t.reshape(a * b, c * d).astype(jnp.float32)
        return (f @ f.T) / (a * b * c * d)

    loss_ref = jnp.mean((gram_ref(x) - gram_ref(target_feature)) ** 2)
    assert bool(jnp.allclose(loss, loss_ref, rtol=1e-5, atol=1e-6))

    g = gram_matrix_pallas(x)
    assert bool(jnp.allclose(g, gram_ref(x), rtol=1e-5, atol=1e-6))

    print("KERNEL_OK")
</pallas_src>

<mosaic_0001>
module attributes {stable_mosaic.version = 11 : i64} {
  func.func @kernel(%arg0: i32, %arg1: i32, %arg2: memref<8x256xf32, #tpu.memory_space<vmem>>, %arg3: memref<8x8xf32, #tpu.memory_space<vmem>>, %arg4: memref<8x8xf32, #tpu.memory_space<vmem>>) attributes {dimension_semantics = [#tpu.dimension_semantics<parallel>, #tpu.dimension_semantics<arbitrary>], iteration_bounds = array<i64: 1, 1>, scalar_prefetch = 0 : i64, scratch_operands = 1 : i64, tpu.core_type = #tpu.core_type<tc>, window_params = [{transform_indices = @transform_0, window_bounds = array<i64: 8, 256>}, {transform_indices = @transform_1, window_bounds = array<i64: 8, 8>}]} {
    %c0_i32 = arith.constant 0 : i32
    %0 = arith.cmpi eq, %arg1, %c0_i32 : i32
    %1 = arith.extui %0 : i1 to i32
    %c0_i32_0 = arith.constant 0 : i32
    %2 = arith.cmpi ne, %1, %c0_i32_0 : i32
    scf.if %2 {
      %cst_9 = arith.constant 0.000000e+00 : f32
      %15 = vector.broadcast %cst_9 : f32 to vector<8x8xf32>
      %c0_10 = arith.constant 0 : index
      %c0_11 = arith.constant 0 : index
      %16 = vector.load %arg4[%c0_10, %c0_11] : memref<8x8xf32, #tpu.memory_space<vmem>>, vector<8x8xf32>
      tpu.vector_store %arg4[%c0_10, %c0_11], %15 {strides = array<i32>} : memref<8x8xf32, #tpu.memory_space<vmem>>, vector<8x8xf32>,
    } else {
    }
    %c8_i32 = arith.constant 8 : i32
    %3 = arith.muli %arg0, %c8_i32 : i32
    %4 = tpu.assume_multiple %3, 8 : i32
    %5 = arith.index_cast %4 : i32 to index
    %c0 = arith.constant 0 : index
    %6 = vector.load %arg2[%5, %c0] : memref<8x256xf32, #tpu.memory_space<vmem>>, vector<8x256xf32>
    %c0_1 = arith.constant 0 : index
    %c0_2 = arith.constant 0 : index
    %7 = vector.load %arg4[%c0_1, %c0_2] : memref<8x8xf32, #tpu.memory_space<vmem>>, vector<8x8xf32>
    %c0_3 = arith.constant 0 : index
    %c0_4 = arith.constant 0 : index
    %8 = vector.load %arg2[%c0_3, %c0_4] : memref<8x256xf32, #tpu.memory_space<vmem>>, vector<8x256xf32>
    %cst = arith.constant dense<0.000000e+00> : vector<8x8xf32>
    %9 = tpu.matmul %6, %8, %cst {dimension_numbers = #tpu.dot_dimension_numbers<[1], [1], [0], [0], [0, 0, 1, 0], [], []>} : vector<8x256xf32>, vector<8x256xf32>, vector<8x8xf32> -> vector<8x8xf32>
    %10 = arith.addf %7, %9 : vector<8x8xf32>
    %c0_5 = arith.constant 0 : index
    %c0_6 = arith.constant 0 : index
    %11 = vector.load %arg4[%c0_5, %c0_6] : memref<8x8xf32, #tpu.memory_space<vmem>>, vector<8x8xf32>
    tpu.vector_store %arg4[%c0_5, %c0_6], %10 {strides = array<i32>} : memref<8x8xf32, #tpu.memory_space<vmem>>, vector<8x8xf32>,
    %c0_i32_7 = arith.constant 0 : i32
    %12 = arith.cmpi eq, %arg1, %c0_i32_7 : i32
    %13 = arith.extui %12 : i1 to i32
    %c0_i32_8 = arith.constant 0 : i32
    %14 = arith.cmpi ne, %13, %c0_i32_8 : i32
    scf.if %14 {
      %c0_9 = arith.constant 0 : index
      %c0_10 = arith.constant 0 : index
      %15 = vector.load %arg4[%c0_9, %c0_10] : memref<8x8xf32, #tpu.memory_space<vmem>>, vector<8x8xf32>
      %cst_11 = arith.constant 4.8828125E-4 : f32
      %16 = vector.broadcast %cst_11 : f32 to vector<8x8xf32>
      %17 = arith.mulf %15, %16 : vector<8x8xf32>
      %c0_12 = arith.constant 0 : index
      %c0_13 = arith.constant 0 : index
      %18 = vector.load %arg3[%c0_12, %c0_13] : memref<8x8xf32, #tpu.memory_space<vmem>>, vector<8x8xf32>
      tpu.vector_store %arg3[%c0_12, %c0_13], %17 {strides = array<i32>} : memref<8x8xf32, #tpu.memory_space<vmem>>, vector<8x8xf32>,
    } else {
    }
    return
  }
  func.func @transform_0(%arg0: i32, %arg1: i32) -> (i32, i32) {
    %c0_i32 = arith.constant 0 : i32
    %c0_i32_0 = arith.constant 0 : i32
    return %c0_i32, %arg1 : i32, i32
  }
  func.func @transform_1(%arg0: i32, %arg1: i32) -> (i32, i32) {
    %c0_i32 = arith.constant 0 : i32
    %c0_i32_0 = arith.constant 0 : i32
    return %arg0, %c0_i32 : i32, i32
  }
}

</mosaic_0001>

<bundles_post_ra>
// kernel: tpu_custom_call.1
= control target key start
LH: loop header
LB: loop body
LE: loop exit
PB: predicated region body
PF: predicated region fallthrough
CT: control target
= control target key end

     0   :  { %6 = vsyncpa [#allocation4], 0  ;;  %s185_s0 = inlined_call_operand.hbm [shape: f32[8,256], index: 0, kind: input, shape index: {}]   ;;  %s186_s1 = inlined_call_operand.hbm [shape: f32[8,8], index: 1, kind: output, shape index: {}]  }
   0x1   :  { %7 = vsyncpa [#allocation5], 0  ;;  %s13_s8 = sshll.u32 %s185_s0, 4  ;;  %s163_s9 = smov [#allocation3]   ;;  %s14_s8 = int_to_ptr.hbm [resolvable:$true] %s13_s8 }
   0x2   :  { %s15_s10 = sshll.u32 %s163_s9, 4  ;;  %s16_s10 = int_to_ptr.vmem [resolvable:$true] %s15_s10 }
   0x3   :  { %18 = dma.hbm_to_vmem [thread:$0]  %s14_s8, 256, %s16_s10, [#allocation4]  }
   0x4   :  { %159 = dma.done.wait [#allocation4], 256  }
   0x5   :  { %160 = vsyncadd [#allocation4], 4294967040  ;;  %v38_v0 = vld [vmem:[#allocation3] sm:$0xff]  ;;  %v39_v1 = vld [vmem:[#allocation3 + $0x8] sm:$0xff]  ;;  %vm27_vm0 = vcmask 64512   ;;  %v164_v2 = vmov 0.0  }
   0x6   :  { %55 = vmatpush.xpose.msra.mxu0 %v38_v0  ;;  %75 = vmatpush.xpose.msra.mxu1 %v39_v1  ;;  %28 = vst.msk [vmem:[#allocation2] sm:$0xff] %vm27_vm0, %v164_v2  ;;  %s165_s0 = smov [#allocation6]   ;;  %s96_s14 = sshll.u32 %s186_s1, 4  ;;  %s97_s14 = int_to_ptr.hbm [resolvable:$true] %s96_s14 }
   0x7   :  { %s94_s11 = sshll.u32 %s165_s0, 4  ;;  %s95_s11 = int_to_ptr.vmem [resolvable:$true] %s94_s11 }
   0x9   :  { %56 = vmatmul.f32.vlgmr.msra.gmra.mxu0 %v38_v0  ;;  %76 = vmatmul.f32.vlgmr.msra.gmra.mxu1 %v39_v1 }
   0xd   :  { %v37_v4 = vld [vmem:[#allocation2] sm:$0xff] }
  0x86   :  { %v57_v3 = vpop.f32.mrf.mxu0  ;;  %v77_v5 = vpop.f32.mrf.mxu1 }
  0x87   :  { %v78_v6 = vadd.f32 %v77_v5, %v57_v3 }
  0x89   :  { %v80_v7 = vadd.f32 %v78_v6, %v37_v4 }
  0x8b   :  { %82 = vst.msk [vmem:[#allocation2] sm:$0xff] %vm27_vm0, %v80_v7 }
  0x92   :  { %v86_v8 = vld [vmem:[#allocation2] sm:$0xff] }
  0x93   :  { %v87_v9 = vmul.f32 0.00048828125, %v86_v8 }
  0x95   :  { %88 = vst.msk [vmem:[#allocation6] sm:$0xff] %vm27_vm0, %v87_v9 }
  0x96   :  { %99 = dma.vmem_to_hbm [thread:$0]  %s95_s11, 128, %s97_s14, [#allocation5]  }
  0x97   :  { %161 = dma.done.wait [#allocation5], 128  }
  0x98   :  { %162 = vsyncadd [#allocation5], 4294967168 }
  0x99   :  { %104 = vsyncpa [#allocation4], 1 }
  0x9a   :  { %105 = vsyncpa [#allocation5], 1 }

</bundles_post_ra>
